<compile_context>
chip_gen: v7x
topology: tpu7x:2x2x1
jax: 0.10.0
libtpu: 0.0.40
codegen_flags: <defaults>
</compile_context>

<pallas_src>
import jax
import jax.numpy as jnp
from jax.experimental import pallas as pl
from jax.experimental.pallas import tpu as pltpu


def _identity_copy_kernel(x_ref, o_ref):
    # Dropout with p=0.0: keep-prob = 1.0, scale = 1/(1-0) = 1 -> exact identity.
    # No RNG / masking needed.
    o_ref[...] = x_ref[...]


@jax.jit
def _dropout_p0_pallas(x):
    """Identity pass-through via a single-block Pallas TPU kernel.

    x: [N, H, W, C] float array (whole slab must fit VMEM; ~803 KiB here).
    """
    n, h, w, c = x.shape
    rows = n * h * w                  # 1*28*28 = 784
    x2d = x.reshape(rows, c)          # (784, 256): lane-dense last dim

    out2d = pl.pallas_call(
        _identity_copy_kernel,
        out_shape=jax.ShapeDtypeStruct((rows, c), x.dtype),
        # Single full-array block resident in VMEM — no grid, no pipelining
        # overhead for this tiny (~803 KiB) slab.
        in_specs=[pl.BlockSpec(memory_space=pltpu.MemorySpace.VMEM)],
        out_specs=pl.BlockSpec(memory_space=pltpu.MemorySpace.VMEM),
        # Reuse the input HBM buffer for the output (identity op: the only real
        # cost is allocation + traffic).
        input_output_aliases={0: 0},
    )(x2d)

    return out2d.reshape(n, h, w, c)


def dropout(x, p=0.0, *, force_kernel=False):
    """Dropout forward (inference semantics of the module).

    For p == 0.0 (the module's configuration) this is an exact identity, so the
    highest-value optimization is to not launch a kernel at all.  Pass
    force_kernel=True to route through the Pallas identity kernel instead
    (used below to validate the TPU path).
    """
    if p != 0.0:
        # TODO(synk): p > 0 (training-mode RNG masking) not needed by this module.
        raise NotImplementedError("Only p=0.0 is required by module M.")
    if not force_kernel:
        return x  # zero-cost identity: no HBM read/write, no kernel launch
    return _dropout_p0_pallas(x)


if __name__ == "__main__":
    key = jax.random.PRNGKey(0)
    x77 = jax.random.normal(key, (1, 28, 28, 256), dtype=jnp.float32)

    # Module forward path (p=0.0 -> short-circuited identity).
    x78 = dropout(x77, p=0.0)
    jax.block_until_ready(x78)
    assert x78.shape == x77.shape
    assert x78.dtype == x77.dtype
    assert bool(jnp.all(x78 == x77))

    # Exercise the Pallas kernel once on TPU and verify exact identity.
    x78_k = dropout(x77, p=0.0, force_kernel=True)
    jax.block_until_ready(x78_k)
    assert x78_k.shape == x77.shape
    assert x78_k.dtype == x77.dtype
    assert bool(jnp.all(x78_k == x77))

    print("KERNEL_OK")
</pallas_src>

<mosaic_0001>
module attributes {stable_mosaic.version = 11 : i64} {
  func.func @_identity_copy_kernel(%arg0: memref<784x256xf32, #tpu.memory_space<vmem>>, %arg1: memref<784x256xf32, #tpu.memory_space<vmem>>) attributes {dimension_semantics = [], scalar_prefetch = 0 : i64, scratch_operands = 0 : i64, tpu.core_type = #tpu.core_type<tc>} {
    %c0 = arith.constant 0 : index
    %c0_0 = arith.constant 0 : index
    %0 = vector.load %arg0[%c0, %c0_0] : memref<784x256xf32, #tpu.memory_space<vmem>>, vector<784x256xf32>
    %c0_1 = arith.constant 0 : index
    %c0_2 = arith.constant 0 : index
    %1 = vector.load %arg1[%c0_1, %c0_2] : memref<784x256xf32, #tpu.memory_space<vmem>>, vector<784x256xf32>
    tpu.vector_store %arg1[%c0_1, %c0_2], %0 {strides = array<i32>} : memref<784x256xf32, #tpu.memory_space<vmem>>, vector<784x256xf32>,
    return
  }
}

</mosaic_0001>

<bundles_post_ra>
// kernel: _dropout_p0_pallas.1
= control target key start
LH: loop header
LB: loop body
LE: loop exit
PB: predicated region body
PF: predicated region fallthrough
CT: control target
= control target key end

     0   :  { %s1590_s0 = inlined_call_operand.vmem [shape: f32[784,256], index: 0, kind: input, shape index: {}, may-alias: {0,1}]   ;;  %s1591_s1 = inlined_call_operand.vmem [shape: f32[784,256], index: 1, kind: output, shape index: {}, may-alias: {0,1}]  }
   0x1   :  { %v8_v0 = vld [vmem:[%s1590_s0] sm:$0xff]  ;;  %v9_v1 = vld [vmem:[%s1590_s0 + $0x8] sm:$0xff]  ;;  %v10_v2 = vld [vmem:[%s1590_s0 + $0x10] sm:$0xff] }
   0x2   :  { %204 = vst [vmem:[%s1591_s1] sm:$0xff] %v8_v0  ;;  %205 = vst [vmem:[%s1591_s1 + $0x8] sm:$0xff] %v9_v1 }
   0x3   :  { %206 = vst [vmem:[%s1591_s1 + $0x10] sm:$0xff] %v10_v2 }
   0xa   :  { %v11_v3 = vld [vmem:[%s1590_s0 + $0x18] sm:$0xff]  ;;  %v12_v4 = vld [vmem:[%s1590_s0 + $0x20] sm:$0xff]  ;;  %v13_v5 = vld [vmem:[%s1590_s0 + $0x28] sm:$0xff] }
   0xb   :  { %207 = vst [vmem:[%s1591_s1 + $0x18] sm:$0xff] %v11_v3  ;;  %208 = vst [vmem:[%s1591_s1 + $0x20] sm:$0xff] %v12_v4 }
   0xc   :  { %209 = vst [vmem:[%s1591_s1 + $0x28] sm:$0xff] %v13_v5 }
  0x13   :  { %v14_v6 = vld [vmem:[%s1590_s0 + $0x30] sm:$0xff]  ;;  %v15_v7 = vld [vmem:[%s1590_s0 + $0x38] sm:$0xff]  ;;  %v16_v8 = vld [vmem:[%s1590_s0 + $0x40] sm:$0xff] }
  0x14   :  { %210 = vst [vmem:[%s1591_s1 + $0x30] sm:$0xff] %v14_v6  ;;  %211 = vst [vmem:[%s1591_s1 + $0x38] sm:$0xff] %v15_v7 }
  0x15   :  { %212 = vst [vmem:[%s1591_s1 + $0x40] sm:$0xff] %v16_v8 }
  0x1c   :  { %v17_v9 = vld [vmem:[%s1590_s0 + $0x48] sm:$0xff]  ;;  %v18_v10 = vld [vmem:[%s1590_s0 + $0x50] sm:$0xff]  ;;  %v19_v11 = vld [vmem:[%s1590_s0 + $0x58] sm:$0xff] }
  0x1d   :  { %213 = vst [vmem:[%s1591_s1 + $0x48] sm:$0xff] %v17_v9  ;;  %214 = vst [vmem:[%s1591_s1 + $0x50] sm:$0xff] %v18_v10 }
  0x1e   :  { %215 = vst [vmem:[%s1591_s1 + $0x58] sm:$0xff] %v19_v11 }
  0x25   :  { %v20_v12 = vld [vmem:[%s1590_s0 + $0x60] sm:$0xff]  ;;  %v21_v13 = vld [vmem:[%s1590_s0 + $0x68] sm:$0xff]  ;;  %v22_v14 = vld [vmem:[%s1590_s0 + $0x70] sm:$0xff] }
  0x26   :  { %216 = vst [vmem:[%s1591_s1 + $0x60] sm:$0xff] %v20_v12  ;;  %217 = vst [vmem:[%s1591_s1 + $0x68] sm:$0xff] %v21_v13 }
  0x27   :  { %218 = vst [vmem:[%s1591_s1 + $0x70] sm:$0xff] %v22_v14 }
  0x2e   :  { %v23_v15 = vld [vmem:[%s1590_s0 + $0x78] sm:$0xff]  ;;  %v24_v16 = vld [vmem:[%s1590_s0 + $0x80] sm:$0xff]  ;;  %v25_v17 = vld [vmem:[%s1590_s0 + $0x88] sm:$0xff] }
  0x2f   :  { %219 = vst [vmem:[%s1591_s1 + $0x78] sm:$0xff] %v23_v15  ;;  %220 = vst [vmem:[%s1591_s1 + $0x80] sm:$0xff] %v24_v16 }
  0x30   :  { %221 = vst [vmem:[%s1591_s1 + $0x88] sm:$0xff] %v25_v17 }
  0x37   :  { %v26_v18 = vld [vmem:[%s1590_s0 + $0x90] sm:$0xff]  ;;  %v27_v19 = vld [vmem:[%s1590_s0 + $0x98] sm:$0xff]  ;;  %v28_v20 = vld [vmem:[%s1590_s0 + $0xa0] sm:$0xff] }
  0x38   :  { %222 = vst [vmem:[%s1591_s1 + $0x90] sm:$0xff] %v26_v18  ;;  %223 = vst [vmem:[%s1591_s1 + $0x98] sm:$0xff] %v27_v19 }
  0x39   :  { %224 = vst [vmem:[%s1591_s1 + $0xa0] sm:$0xff] %v28_v20 }
  0x40   :  { %v29_v21 = vld [vmem:[%s1590_s0 + $0xa8] sm:$0xff]  ;;  %v30_v22 = vld [vmem:[%s1590_s0 + $0xb0] sm:$0xff]  ;;  %v31_v23 = vld [vmem:[%s1590_s0 + $0xb8] sm:$0xff] }
  0x41   :  { %225 = vst [vmem:[%s1591_s1 + $0xa8] sm:$0xff] %v29_v21  ;;  %226 = vst [vmem:[%s1591_s1 + $0xb0] sm:$0xff] %v30_v22 }
  0x42   :  { %227 = vst [vmem:[%s1591_s1 + $0xb8] sm:$0xff] %v31_v23 }
  0x49   :  { %v32_v24 = vld [vmem:[%s1590_s0 + $0xc0] sm:$0xff]  ;;  %v33_v25 = vld [vmem:[%s1590_s0 + $0xc8] sm:$0xff]  ;;  %v34_v26 = vld [vmem:[%s1590_s0 + $0xd0] sm:$0xff] }
  0x4a   :  { %228 = vst [vmem:[%s1591_s1 + $0xc0] sm:$0xff] %v32_v24  ;;  %229 = vst [vmem:[%s1591_s1 + $0xc8] sm:$0xff] %v33_v25 }
  0x4b   :  { %230 = vst [vmem:[%s1591_s1 + $0xd0] sm:$0xff] %v34_v26 }
  0x52   :  { %v35_v27 = vld [vmem:[%s1590_s0 + $0xd8] sm:$0xff]  ;;  %v36_v28 = vld [vmem:[%s1590_s0 + $0xe0] sm:$0xff]  ;;  %v37_v29 = vld [vmem:[%s1590_s0 + $0xe8] sm:$0xff] }
  0x53   :  { %231 = vst [vmem:[%s1591_s1 + $0xd8] sm:$0xff] %v35_v27  ;;  %232 = vst [vmem:[%s1591_s1 + $0xe0] sm:$0xff] %v36_v28 }
  0x54   :  { %233 = vst [vmem:[%s1591_s1 + $0xe8] sm:$0xff] %v37_v29 }
  0x5b   :  { %v38_v30 = vld [vmem:[%s1590_s0 + $0xf0] sm:$0xff]  ;;  %v39_v31 = vld [vmem:[%s1590_s0 + $0xf8] sm:$0xff]  ;;  %v40_v32 = vld [vmem:[%s1590_s0 + $0x100] sm:$0xff] }
  0x5c   :  { %234 = vst [vmem:[%s1591_s1 + $0xf0] sm:$0xff] %v38_v30  ;;  %235 = vst [vmem:[%s1591_s1 + $0xf8] sm:$0xff] %v39_v31 }
  0x5d   :  { %236 = vst [vmem:[%s1591_s1 + $0x100] sm:$0xff] %v40_v32 }
  0x64   :  { %v41_v33 = vld [vmem:[%s1590_s0 + $0x108] sm:$0xff]  ;;  %v42_v34 = vld [vmem:[%s1590_s0 + $0x110] sm:$0xff]  ;;  %v43_v35 = vld [vmem:[%s1590_s0 + $0x118] sm:$0xff] }
  0x65   :  { %237 = vst [vmem:[%s1591_s1 + $0x108] sm:$0xff] %v41_v33  ;;  %238 = vst [vmem:[%s1591_s1 + $0x110] sm:$0xff] %v42_v34 }
  0x66   :  { %239 = vst [vmem:[%s1591_s1 + $0x118] sm:$0xff] %v43_v35 }
  0x6d   :  { %v44_v36 = vld [vmem:[%s1590_s0 + $0x120] sm:$0xff]  ;;  %v45_v37 = vld [vmem:[%s1590_s0 + $0x128] sm:$0xff]  ;;  %v46_v38 = vld [vmem:[%s1590_s0 + $0x130] sm:$0xff] }
  0x6e   :  { %240 = vst [vmem:[%s1591_s1 + $0x120] sm:$0xff] %v44_v36  ;;  %241 = vst [vmem:[%s1591_s1 + $0x128] sm:$0xff] %v45_v37 }
  0x6f   :  { %242 = vst [vmem:[%s1591_s1 + $0x130] sm:$0xff] %v46_v38 }
  0x76   :  { %v47_v39 = vld [vmem:[%s1590_s0 + $0x138] sm:$0xff]  ;;  %v48_v40 = vld [vmem:[%s1590_s0 + $0x140] sm:$0xff]  ;;  %v49_v41 = vld [vmem:[%s1590_s0 + $0x148] sm:$0xff] }
  0x77   :  { %243 = vst [vmem:[%s1591_s1 + $0x138] sm:$0xff] %v47_v39  ;;  %244 = vst [vmem:[%s1591_s1 + $0x140] sm:$0xff] %v48_v40 }
  0x78   :  { %245 = vst [vmem:[%s1591_s1 + $0x148] sm:$0xff] %v49_v41 }
  0x7f   :  { %v50_v42 = vld [vmem:[%s1590_s0 + $0x150] sm:$0xff]  ;;  %v51_v43 = vld [vmem:[%s1590_s0 + $0x158] sm:$0xff]  ;;  %v52_v44 = vld [vmem:[%s1590_s0 + $0x160] sm:$0xff] }
  0x80   :  { %246 = vst [vmem:[%s1591_s1 + $0x150] sm:$0xff] %v50_v42  ;;  %247 = vst [vmem:[%s1591_s1 + $0x158] sm:$0xff] %v51_v43 }
  0x81   :  { %248 = vst [vmem:[%s1591_s1 + $0x160] sm:$0xff] %v52_v44 }
  0x88   :  { %v53_v45 = vld [vmem:[%s1590_s0 + $0x168] sm:$0xff]  ;;  %v54_v46 = vld [vmem:[%s1590_s0 + $0x170] sm:$0xff]  ;;  %v55_v47 = vld [vmem:[%s1590_s0 + $0x178] sm:$0xff] }
  0x89   :  { %249 = vst [vmem:[%s1591_s1 + $0x168] sm:$0xff] %v53_v45  ;;  %250 = vst [vmem:[%s1591_s1 + $0x170] sm:$0xff] %v54_v46 }
  0x8a   :  { %251 = vst [vmem:[%s1591_s1 + $0x178] sm:$0xff] %v55_v47 }
  0x91   :  { %v56_v48 = vld [vmem:[%s1590_s0 + $0x180] sm:$0xff]  ;;  %v57_v49 = vld [vmem:[%s1590_s0 + $0x188] sm:$0xff]  ;;  %v58_v50 = vld [vmem:[%s1590_s0 + $0x190] sm:$0xff] }
  0x92   :  { %252 = vst [vmem:[%s1591_s1 + $0x180] sm:$0xff] %v56_v48  ;;  %253 = vst [vmem:[%s1591_s1 + $0x188] sm:$0xff] %v57_v49 }
  0x93   :  { %254 = vst [vmem:[%s1591_s1 + $0x190] sm:$0xff] %v58_v50 }
  0x9a   :  { %v59_v51 = vld [vmem:[%s1590_s0 + $0x198] sm:$0xff]  ;;  %v60_v52 = vld [vmem:[%s1590_s0 + $0x1a0] sm:$0xff]  ;;  %v61_v53 = vld [vmem:[%s1590_s0 + $0x1a8] sm:$0xff] }
  0x9b   :  { %255 = vst [vmem:[%s1591_s1 + $0x198] sm:$0xff] %v59_v51  ;;  %256 = vst [vmem:[%s1591_s1 + $0x1a0] sm:$0xff] %v60_v52 }
  0x9c   :  { %257 = vst [vmem:[%s1591_s1 + $0x1a8] sm:$0xff] %v61_v53 }
  0xa3   :  { %v62_v54 = vld [vmem:[%s1590_s0 + $0x1b0] sm:$0xff]  ;;  %v63_v55 = vld [vmem:[%s1590_s0 + $0x1b8] sm:$0xff]  ;;  %v64_v56 = vld [vmem:[%s1590_s0 + $0x1c0] sm:$0xff] }
  0xa4   :  { %258 = vst [vmem:[%s1591_s1 + $0x1b0] sm:$0xff] %v62_v54  ;;  %259 = vst [vmem:[%s1591_s1 + $0x1b8] sm:$0xff] %v63_v55 }
  0xa5   :  { %260 = vst [vmem:[%s1591_s1 + $0x1c0] sm:$0xff] %v64_v56 }
  0xac   :  { %v65_v57 = vld [vmem:[%s1590_s0 + $0x1c8] sm:$0xff]  ;;  %v66_v58 = vld [vmem:[%s1590_s0 + $0x1d0] sm:$0xff]  ;;  %v67_v59 = vld [vmem:[%s1590_s0 + $0x1d8] sm:$0xff] }
  0xad   :  { %261 = vst [vmem:[%s1591_s1 + $0x1c8] sm:$0xff] %v65_v57  ;;  %262 = vst [vmem:[%s1591_s1 + $0x1d0] sm:$0xff] %v66_v58 }
  0xae   :  { %263 = vst [vmem:[%s1591_s1 + $0x1d8] sm:$0xff] %v67_v59 }
  0xb5   :  { %v68_v60 = vld [vmem:[%s1590_s0 + $0x1e0] sm:$0xff]  ;;  %v69_v61 = vld [vmem:[%s1590_s0 + $0x1e8] sm:$0xff]  ;;  %v70_v62 = vld [vmem:[%s1590_s0 + $0x1f0] sm:$0xff] }
  0xb6   :  { %264 = vst [vmem:[%s1591_s1 + $0x1e0] sm:$0xff] %v68_v60  ;;  %265 = vst [vmem:[%s1591_s1 + $0x1e8] sm:$0xff] %v69_v61 }
  0xb7   :  { %266 = vst [vmem:[%s1591_s1 + $0x1f0] sm:$0xff] %v70_v62 }
  0xbe   :  { %v71_v63 = vld [vmem:[%s1590_s0 + $0x1f8] sm:$0xff]  ;;  %v72_v0 = vld [vmem:[%s1590_s0 + $0x200] sm:$0xff]  ;;  %v73_v1 = vld [vmem:[%s1590_s0 + $0x208] sm:$0xff] }
  0xbf   :  { %267 = vst [vmem:[%s1591_s1 + $0x1f8] sm:$0xff] %v71_v63  ;;  %268 = vst [vmem:[%s1591_s1 + $0x200] sm:$0xff] %v72_v0 }
  0xc0   :  { %269 = vst [vmem:[%s1591_s1 + $0x208] sm:$0xff] %v73_v1 }
  0xc7   :  { %v74_v2 = vld [vmem:[%s1590_s0 + $0x210] sm:$0xff]  ;;  %v75_v3 = vld [vmem:[%s1590_s0 + $0x218] sm:$0xff]  ;;  %v76_v4 = vld [vmem:[%s1590_s0 + $0x220] sm:$0xff] }
  0xc8   :  { %270 = vst [vmem:[%s1591_s1 + $0x210] sm:$0xff] %v74_v2  ;;  %271 = vst [vmem:[%s1591_s1 + $0x218] sm:$0xff] %v75_v3 }
  0xc9   :  { %272 = vst [vmem:[%s1591_s1 + $0x220] sm:$0xff] %v76_v4 }
  0xd0   :  { %v77_v5 = vld [vmem:[%s1590_s0 + $0x228] sm:$0xff]  ;;  %v78_v6 = vld [vmem:[%s1590_s0 + $0x230] sm:$0xff]  ;;  %v79_v7 = vld [vmem:[%s1590_s0 + $0x238] sm:$0xff] }
  0xd1   :  { %273 = vst [vmem:[%s1591_s1 + $0x228] sm:$0xff] %v77_v5  ;;  %274 = vst [vmem:[%s1591_s1 + $0x230] sm:$0xff] %v78_v6 }
  0xd2   :  { %275 = vst [vmem:[%s1591_s1 + $0x238] sm:$0xff] %v79_v7 }
  0xd9   :  { %v80_v8 = vld [vmem:[%s1590_s0 + $0x240] sm:$0xff]  ;;  %v81_v9 = vld [vmem:[%s1590_s0 + $0x248] sm:$0xff]  ;;  %v82_v10 = vld [vmem:[%s1590_s0 + $0x250] sm:$0xff] }
  0xda   :  { %276 = vst [vmem:[%s1591_s1 + $0x240] sm:$0xff] %v80_v8  ;;  %277 = vst [vmem:[%s1591_s1 + $0x248] sm:$0xff] %v81_v9 }
  0xdb   :  { %278 = vst [vmem:[%s1591_s1 + $0x250] sm:$0xff] %v82_v10 }
  0xe2   :  { %v83_v11 = vld [vmem:[%s1590_s0 + $0x258] sm:$0xff]  ;;  %v84_v12 = vld [vmem:[%s1590_s0 + $0x260] sm:$0xff]  ;;  %v85_v13 = vld [vmem:[%s1590_s0 + $0x268] sm:$0xff] }
  0xe3   :  { %279 = vst [vmem:[%s1591_s1 + $0x258] sm:$0xff] %v83_v11  ;;  %280 = vst [vmem:[%s1591_s1 + $0x260] sm:$0xff] %v84_v12 }
  0xe4   :  { %281 = vst [vmem:[%s1591_s1 + $0x268] sm:$0xff] %v85_v13 }
  0xeb   :  { %v86_v14 = vld [vmem:[%s1590_s0 + $0x270] sm:$0xff]  ;;  %v87_v15 = vld [vmem:[%s1590_s0 + $0x278] sm:$0xff]  ;;  %v88_v16 = vld [vmem:[%s1590_s0 + $0x280] sm:$0xff] }
  0xec   :  { %282 = vst [vmem:[%s1591_s1 + $0x270] sm:$0xff] %v86_v14  ;;  %283 = vst [vmem:[%s1591_s1 + $0x278] sm:$0xff] %v87_v15 }
  0xed   :  { %284 = vst [vmem:[%s1591_s1 + $0x280] sm:$0xff] %v88_v16 }
  0xf4   :  { %v89_v17 = vld [vmem:[%s1590_s0 + $0x288] sm:$0xff]  ;;  %v90_v18 = vld [vmem:[%s1590_s0 + $0x290] sm:$0xff]  ;;  %v91_v19 = vld [vmem:[%s1590_s0 + $0x298] sm:$0xff] }
  0xf5   :  { %285 = vst [vmem:[%s1591_s1 + $0x288] sm:$0xff] %v89_v17  ;;  %286 = vst [vmem:[%s1591_s1 + $0x290] sm:$0xff] %v90_v18 }
  0xf6   :  { %287 = vst [vmem:[%s1591_s1 + $0x298] sm:$0xff] %v91_v19 }
  0xfd   :  { %v92_v20 = vld [vmem:[%s1590_s0 + $0x2a0] sm:$0xff]  ;;  %v93_v21 = vld [vmem:[%s1590_s0 + $0x2a8] sm:$0xff]  ;;  %v94_v22 = vld [vmem:[%s1590_s0 + $0x2b0] sm:$0xff] }
  0xfe   :  { %288 = vst [vmem:[%s1591_s1 + $0x2a0] sm:$0xff] %v92_v20  ;;  %289 = vst [vmem:[%s1591_s1 + $0x2a8] sm:$0xff] %v93_v21 }
  0xff   :  { %290 = vst [vmem:[%s1591_s1 + $0x2b0] sm:$0xff] %v94_v22 }
 0x106   :  { %v95_v23 = vld [vmem:[%s1590_s0 + $0x2b8] sm:$0xff]  ;;  %v96_v24 = vld [vmem:[%s1590_s0 + $0x2c0] sm:$0xff]  ;;  %v97_v25 = vld [vmem:[%s1590_s0 + $0x2c8] sm:$0xff] }
 0x107   :  { %291 = vst [vmem:[%s1591_s1 + $0x2b8] sm:$0xff] %v95_v23  ;;  %292 = vst [vmem:[%s1591_s1 + $0x2c0] sm:$0xff] %v96_v24 }
 0x108   :  { %293 = vst [vmem:[%s1591_s1 + $0x2c8] sm:$0xff] %v97_v25 }
 0x10f   :  { %v98_v26 = vld [vmem:[%s1590_s0 + $0x2d0] sm:$0xff]  ;;  %v99_v27 = vld [vmem:[%s1590_s0 + $0x2d8] sm:$0xff]  ;;  %v100_v28 = vld [vmem:[%s1590_s0 + $0x2e0] sm:$0xff] }
 0x110   :  { %294 = vst [vmem:[%s1591_s1 + $0x2d0] sm:$0xff] %v98_v26  ;;  %295 = vst [vmem:[%s1591_s1 + $0x2d8] sm:$0xff] %v99_v27 }
 0x111   :  { %296 = vst [vmem:[%s1591_s1 + $0x2e0] sm:$0xff] %v100_v28 }
 0x118   :  { %v101_v29 = vld [vmem:[%s1590_s0 + $0x2e8] sm:$0xff]  ;;  %v102_v30 = vld [vmem:[%s1590_s0 + $0x2f0] sm:$0xff]  ;;  %v103_v31 = vld [vmem:[%s1590_s0 + $0x2f8] sm:$0xff] }
 0x119   :  { %297 = vst [vmem:[%s1591_s1 + $0x2e8] sm:$0xff] %v101_v29  ;;  %298 = vst [vmem:[%s1591_s1 + $0x2f0] sm:$0xff] %v102_v30 }
 0x11a   :  { %299 = vst [vmem:[%s1591_s1 + $0x2f8] sm:$0xff] %v103_v31 }
 0x121   :  { %v104_v32 = vld [vmem:[%s1590_s0 + $0x300] sm:$0xff]  ;;  %v105_v33 = vld [vmem:[%s1590_s0 + $0x308] sm:$0xff]  ;;  %v106_v34 = vld [vmem:[%s1590_s0 + $0x310] sm:$0xff] }
 0x122   :  { %300 = vst [vmem:[%s1591_s1 + $0x300] sm:$0xff] %v104_v32  ;;  %301 = vst [vmem:[%s1591_s1 + $0x308] sm:$0xff] %v105_v33 }
 0x123   :  { %302 = vst [vmem:[%s1591_s1 + $0x310] sm:$0xff] %v106_v34 }
 0x12a   :  { %v107_v35 = vld [vmem:[%s1590_s0 + $0x318] sm:$0xff]  ;;  %v108_v36 = vld [vmem:[%s1590_s0 + $0x320] sm:$0xff]  ;;  %v109_v37 = vld [vmem:[%s1590_s0 + $0x328] sm:$0xff] }
 0x12b   :  { %303 = vst [vmem:[%s1591_s1 + $0x318] sm:$0xff] %v107_v35  ;;  %304 = vst [vmem:[%s1591_s1 + $0x320] sm:$0xff] %v108_v36 }
 0x12c   :  { %305 = vst [vmem:[%s1591_s1 + $0x328] sm:$0xff] %v109_v37 }
 0x133   :  { %v110_v38 = vld [vmem:[%s1590_s0 + $0x330] sm:$0xff]  ;;  %v111_v39 = vld [vmem:[%s1590_s0 + $0x338] sm:$0xff]  ;;  %v112_v40 = vld [vmem:[%s1590_s0 + $0x340] sm:$0xff] }
 0x134   :  { %306 = vst [vmem:[%s1591_s1 + $0x330] sm:$0xff] %v110_v38  ;;  %307 = vst [vmem:[%s1591_s1 + $0x338] sm:$0xff] %v111_v39 }
 0x135   :  { %308 = vst [vmem:[%s1591_s1 + $0x340] sm:$0xff] %v112_v40 }
 0x13c   :  { %v113_v41 = vld [vmem:[%s1590_s0 + $0x348] sm:$0xff]  ;;  %v114_v42 = vld [vmem:[%s1590_s0 + $0x350] sm:$0xff]  ;;  %v115_v43 = vld [vmem:[%s1590_s0 + $0x358] sm:$0xff] }
 0x13d   :  { %309 = vst [vmem:[%s1591_s1 + $0x348] sm:$0xff] %v113_v41  ;;  %310 = vst [vmem:[%s1591_s1 + $0x350] sm:$0xff] %v114_v42 }
 0x13e   :  { %311 = vst [vmem:[%s1591_s1 + $0x358] sm:$0xff] %v115_v43 }
 0x145   :  { %v116_v44 = vld [vmem:[%s1590_s0 + $0x360] sm:$0xff]  ;;  %v117_v45 = vld [vmem:[%s1590_s0 + $0x368] sm:$0xff]  ;;  %v118_v46 = vld [vmem:[%s1590_s0 + $0x370] sm:$0xff] }
 0x146   :  { %312 = vst [vmem:[%s1591_s1 + $0x360] sm:$0xff] %v116_v44  ;;  %313 = vst [vmem:[%s1591_s1 + $0x368] sm:$0xff] %v117_v45 }
 0x147   :  { %314 = vst [vmem:[%s1591_s1 + $0x370] sm:$0xff] %v118_v46 }
 0x14e   :  { %v119_v47 = vld [vmem:[%s1590_s0 + $0x378] sm:$0xff]  ;;  %v120_v48 = vld [vmem:[%s1590_s0 + $0x380] sm:$0xff]  ;;  %v121_v49 = vld [vmem:[%s1590_s0 + $0x388] sm:$0xff] }
 0x14f   :  { %315 = vst [vmem:[%s1591_s1 + $0x378] sm:$0xff] %v119_v47  ;;  %316 = vst [vmem:[%s1591_s1 + $0x380] sm:$0xff] %v120_v48 }
 0x150   :  { %317 = vst [vmem:[%s1591_s1 + $0x388] sm:$0xff] %v121_v49 }
 0x157   :  { %v122_v50 = vld [vmem:[%s1590_s0 + $0x390] sm:$0xff]  ;;  %v123_v51 = vld [vmem:[%s1590_s0 + $0x398] sm:$0xff]  ;;  %v124_v52 = vld [vmem:[%s1590_s0 + $0x3a0] sm:$0xff] }
 0x158   :  { %318 = vst [vmem:[%s1591_s1 + $0x390] sm:$0xff] %v122_v50  ;;  %319 = vst [vmem:[%s1591_s1 + $0x398] sm:$0xff] %v123_v51 }
 0x159   :  { %320 = vst [vmem:[%s1591_s1 + $0x3a0] sm:$0xff] %v124_v52 }
 0x160   :  { %v125_v53 = vld [vmem:[%s1590_s0 + $0x3a8] sm:$0xff]  ;;  %v126_v54 = vld [vmem:[%s1590_s0 + $0x3b0] sm:$0xff]  ;;  %v127_v55 = vld [vmem:[%s1590_s0 + $0x3b8] sm:$0xff] }
 0x161   :  { %321 = vst [vmem:[%s1591_s1 + $0x3a8] sm:$0xff] %v125_v53  ;;  %322 = vst [vmem:[%s1591_s1 + $0x3b0] sm:$0xff] %v126_v54 }
 0x162   :  { %323 = vst [vmem:[%s1591_s1 + $0x3b8] sm:$0xff] %v127_v55 }
 0x169   :  { %v128_v56 = vld [vmem:[%s1590_s0 + $0x3c0] sm:$0xff]  ;;  %v129_v57 = vld [vmem:[%s1590_s0 + $0x3c8] sm:$0xff]  ;;  %v130_v58 = vld [vmem:[%s1590_s0 + $0x3d0] sm:$0xff] }
 0x16a   :  { %324 = vst [vmem:[%s1591_s1 + $0x3c0] sm:$0xff] %v128_v56  ;;  %325 = vst [vmem:[%s1591_s1 + $0x3c8] sm:$0xff] %v129_v57 }
 0x16b   :  { %326 = vst [vmem:[%s1591_s1 + $0x3d0] sm:$0xff] %v130_v58 }
 0x172   :  { %v131_v59 = vld [vmem:[%s1590_s0 + $0x3d8] sm:$0xff]  ;;  %v132_v60 = vld [vmem:[%s1590_s0 + $0x3e0] sm:$0xff]  ;;  %v133_v61 = vld [vmem:[%s1590_s0 + $0x3e8] sm:$0xff] }
 0x173   :  { %327 = vst [vmem:[%s1591_s1 + $0x3d8] sm:$0xff] %v131_v59  ;;  %328 = vst [vmem:[%s1591_s1 + $0x3e0] sm:$0xff] %v132_v60 }
 0x174   :  { %329 = vst [vmem:[%s1591_s1 + $0x3e8] sm:$0xff] %v133_v61 }
 0x17b   :  { %v134_v62 = vld [vmem:[%s1590_s0 + $0x3f0] sm:$0xff]  ;;  %v135_v63 = vld [vmem:[%s1590_s0 + $0x3f8] sm:$0xff]  ;;  %v136_v0 = vld [vmem:[%s1590_s0 + $0x400] sm:$0xff] }
 0x17c   :  { %330 = vst [vmem:[%s1591_s1 + $0x3f0] sm:$0xff] %v134_v62  ;;  %331 = vst [vmem:[%s1591_s1 + $0x3f8] sm:$0xff] %v135_v63 }
 0x17d   :  { %332 = vst [vmem:[%s1591_s1 + $0x400] sm:$0xff] %v136_v0 }
 0x184   :  { %v137_v1 = vld [vmem:[%s1590_s0 + $0x408] sm:$0xff]  ;;  %v138_v2 = vld [vmem:[%s1590_s0 + $0x410] sm:$0xff]  ;;  %v139_v3 = vld [vmem:[%s1590_s0 + $0x418] sm:$0xff] }
 0x185   :  { %333 = vst [vmem:[%s1591_s1 + $0x408] sm:$0xff] %v137_v1  ;;  %334 = vst [vmem:[%s1591_s1 + $0x410] sm:$0xff] %v138_v2 }
 0x186   :  { %335 = vst [vmem:[%s1591_s1 + $0x418] sm:$0xff] %v139_v3 }
 0x18d   :  { %v140_v4 = vld [vmem:[%s1590_s0 + $0x420] sm:$0xff]  ;;  %v141_v5 = vld [vmem:[%s1590_s0 + $0x428] sm:$0xff]  ;;  %v142_v6 = vld [vmem:[%s1590_s0 + $0x430] sm:$0xff] }
 0x18e   :  { %336 = vst [vmem:[%s1591_s1 + $0x420] sm:$0xff] %v140_v4  ;;  %337 = vst [vmem:[%s1591_s1 + $0x428] sm:$0xff] %v141_v5 }
 0x18f   :  { %338 = vst [vmem:[%s1591_s1 + $0x430] sm:$0xff] %v142_v6 }
 0x196   :  { %v143_v7 = vld [vmem:[%s1590_s0 + $0x438] sm:$0xff]  ;;  %v144_v8 = vld [vmem:[%s1590_s0 + $0x440] sm:$0xff]  ;;  %v145_v9 = vld [vmem:[%s1590_s0 + $0x448] sm:$0xff] }
 0x197   :  { %339 = vst [vmem:[%s1591_s1 + $0x438] sm:$0xff] %v143_v7  ;;  %340 = vst [vmem:[%s1591_s1 + $0x440] sm:$0xff] %v144_v8 }
 0x198   :  { %341 = vst [vmem:[%s1591_s1 + $0x448] sm:$0xff] %v145_v9 }
 0x19f   :  { %v146_v10 = vld [vmem:[%s1590_s0 + $0x450] sm:$0xff]  ;;  %v147_v11 = vld [vmem:[%s1590_s0 + $0x458] sm:$0xff]  ;;  %v148_v12 = vld [vmem:[%s1590_s0 + $0x460] sm:$0xff] }
 0x1a0   :  { %342 = vst [vmem:[%s1591_s1 + $0x450] sm:$0xff] %v146_v10  ;;  %343 = vst [vmem:[%s1591_s1 + $0x458] sm:$0xff] %v147_v11 }
 0x1a1   :  { %344 = vst [vmem:[%s1591_s1 + $0x460] sm:$0xff] %v148_v12 }
 0x1a8   :  { %v149_v13 = vld [vmem:[%s1590_s0 + $0x468] sm:$0xff]  ;;  %v150_v14 = vld [vmem:[%s1590_s0 + $0x470] sm:$0xff]  ;;  %v151_v15 = vld [vmem:[%s1590_s0 + $0x478] sm:$0xff] }
 0x1a9   :  { %345 = vst [vmem:[%s1591_s1 + $0x468] sm:$0xff] %v149_v13  ;;  %346 = vst [vmem:[%s1591_s1 + $0x470] sm:$0xff] %v150_v14 }
 0x1aa   :  { %347 = vst [vmem:[%s1591_s1 + $0x478] sm:$0xff] %v151_v15 }
 0x1b1   :  { %v152_v16 = vld [vmem:[%s1590_s0 + $0x480] sm:$0xff]  ;;  %v153_v17 = vld [vmem:[%s1590_s0 + $0x488] sm:$0xff]  ;;  %v154_v18 = vld [vmem:[%s1590_s0 + $0x490] sm:$0xff] }
 0x1b2   :  { %348 = vst [vmem:[%s1591_s1 + $0x480] sm:$0xff] %v152_v16  ;;  %349 = vst [vmem:[%s1591_s1 + $0x488] sm:$0xff] %v153_v17 }
 0x1b3   :  { %350 = vst [vmem:[%s1591_s1 + $0x490] sm:$0xff] %v154_v18 }
 0x1ba   :  { %v155_v19 = vld [vmem:[%s1590_s0 + $0x498] sm:$0xff]  ;;  %v156_v20 = vld [vmem:[%s1590_s0 + $0x4a0] sm:$0xff]  ;;  %v157_v21 = vld [vmem:[%s1590_s0 + $0x4a8] sm:$0xff] }
 0x1bb   :  { %351 = vst [vmem:[%s1591_s1 + $0x498] sm:$0xff] %v155_v19  ;;  %352 = vst [vmem:[%s1591_s1 + $0x4a0] sm:$0xff] %v156_v20 }
 0x1bc   :  { %353 = vst [vmem:[%s1591_s1 + $0x4a8] sm:$0xff] %v157_v21 }
 0x1c3   :  { %v158_v22 = vld [vmem:[%s1590_s0 + $0x4b0] sm:$0xff]  ;;  %v159_v23 = vld [vmem:[%s1590_s0 + $0x4b8] sm:$0xff]  ;;  %v160_v24 = vld [vmem:[%s1590_s0 + $0x4c0] sm:$0xff] }
 0x1c4   :  { %354 = vst [vmem:[%s1591_s1 + $0x4b0] sm:$0xff] %v158_v22  ;;  %355 = vst [vmem:[%s1591_s1 + $0x4b8] sm:$0xff] %v159_v23 }
 0x1c5   :  { %356 = vst [vmem:[%s1591_s1 + $0x4c0] sm:$0xff] %v160_v24 }
 0x1cc   :  { %v161_v25 = vld [vmem:[%s1590_s0 + $0x4c8] sm:$0xff]  ;;  %v162_v26 = vld [vmem:[%s1590_s0 + $0x4d0] sm:$0xff]  ;;  %v163_v27 = vld [vmem:[%s1590_s0 + $0x4d8] sm:$0xff] }
 0x1cd   :  { %357 = vst [vmem:[%s1591_s1 + $0x4c8] sm:$0xff] %v161_v25  ;;  %358 = vst [vmem:[%s1591_s1 + $0x4d0] sm:$0xff] %v162_v26 }
 0x1ce   :  { %359 = vst [vmem:[%s1591_s1 + $0x4d8] sm:$0xff] %v163_v27 }
 0x1d5   :  { %v164_v28 = vld [vmem:[%s1590_s0 + $0x4e0] sm:$0xff]  ;;  %v165_v29 = vld [vmem:[%s1590_s0 + $0x4e8] sm:$0xff]  ;;  %v166_v30 = vld [vmem:[%s1590_s0 + $0x4f0] sm:$0xff] }
 0x1d6   :  { %360 = vst [vmem:[%s1591_s1 + $0x4e0] sm:$0xff] %v164_v28  ;;  %361 = vst [vmem:[%s1591_s1 + $0x4e8] sm:$0xff] %v165_v29 }
 0x1d7   :  { %362 = vst [vmem:[%s1591_s1 + $0x4f0] sm:$0xff] %v166_v30 }
 0x1de   :  { %v167_v31 = vld [vmem:[%s1590_s0 + $0x4f8] sm:$0xff]  ;;  %v168_v32 = vld [vmem:[%s1590_s0 + $0x500] sm:$0xff]  ;;  %v169_v33 = vld [vmem:[%s1590_s0 + $0x508] sm:$0xff] }
 0x1df   :  { %363 = vst [vmem:[%s1591_s1 + $0x4f8] sm:$0xff] %v167_v31  ;;  %364 = vst [vmem:[%s1591_s1 + $0x500] sm:$0xff] %v168_v32 }
 0x1e0   :  { %365 = vst [vmem:[%s1591_s1 + $0x508] sm:$0xff] %v169_v33 }
 0x1e7   :  { %v170_v34 = vld [vmem:[%s1590_s0 + $0x510] sm:$0xff]  ;;  %v171_v35 = vld [vmem:[%s1590_s0 + $0x518] sm:$0xff]  ;;  %v172_v36 = vld [vmem:[%s1590_s0 + $0x520] sm:$0xff] }
 0x1e8   :  { %366 = vst [vmem:[%s1591_s1 + $0x510] sm:$0xff] %v170_v34  ;;  %367 = vst [vmem:[%s1591_s1 + $0x518] sm:$0xff] %v171_v35 }
 0x1e9   :  { %368 = vst [vmem:[%s1591_s1 + $0x520] sm:$0xff] %v172_v36 }
 0x1f0   :  { %v173_v37 = vld [vmem:[%s1590_s0 + $0x528] sm:$0xff]  ;;  %v174_v38 = vld [vmem:[%s1590_s0 + $0x530] sm:$0xff]  ;;  %v175_v39 = vld [vmem:[%s1590_s0 + $0x538] sm:$0xff] }
 0x1f1   :  { %369 = vst [vmem:[%s1591_s1 + $0x528] sm:$0xff] %v173_v37  ;;  %370 = vst [vmem:[%s1591_s1 + $0x530] sm:$0xff] %v174_v38 }
 0x1f2   :  { %371 = vst [vmem:[%s1591_s1 + $0x538] sm:$0xff] %v175_v39 }
 0x1f9   :  { %v176_v40 = vld [vmem:[%s1590_s0 + $0x540] sm:$0xff]  ;;  %v177_v41 = vld [vmem:[%s1590_s0 + $0x548] sm:$0xff]  ;;  %v178_v42 = vld [vmem:[%s1590_s0 + $0x550] sm:$0xff] }
 0x1fa   :  { %372 = vst [vmem:[%s1591_s1 + $0x540] sm:$0xff] %v176_v40  ;;  %373 = vst [vmem:[%s1591_s1 + $0x548] sm:$0xff] %v177_v41 }
 0x1fb   :  { %374 = vst [vmem:[%s1591_s1 + $0x550] sm:$0xff] %v178_v42 }
 0x202   :  { %v179_v43 = vld [vmem:[%s1590_s0 + $0x558] sm:$0xff]  ;;  %v180_v44 = vld [vmem:[%s1590_s0 + $0x560] sm:$0xff]  ;;  %v181_v45 = vld [vmem:[%s1590_s0 + $0x568] sm:$0xff] }
 0x203   :  { %375 = vst [vmem:[%s1591_s1 + $0x558] sm:$0xff] %v179_v43  ;;  %376 = vst [vmem:[%s1591_s1 + $0x560] sm:$0xff] %v180_v44 }
 0x204   :  { %377 = vst [vmem:[%s1591_s1 + $0x568] sm:$0xff] %v181_v45 }
 0x20b   :  { %v182_v46 = vld [vmem:[%s1590_s0 + $0x570] sm:$0xff]  ;;  %v183_v47 = vld [vmem:[%s1590_s0 + $0x578] sm:$0xff]  ;;  %v184_v48 = vld [vmem:[%s1590_s0 + $0x580] sm:$0xff] }
 0x20c   :  { %378 = vst [vmem:[%s1591_s1 + $0x570] sm:$0xff] %v182_v46  ;;  %379 = vst [vmem:[%s1591_s1 + $0x578] sm:$0xff] %v183_v47 }
 0x20d   :  { %380 = vst [vmem:[%s1591_s1 + $0x580] sm:$0xff] %v184_v48 }
 0x214   :  { %v185_v49 = vld [vmem:[%s1590_s0 + $0x588] sm:$0xff]  ;;  %v186_v50 = vld [vmem:[%s1590_s0 + $0x590] sm:$0xff]  ;;  %v187_v51 = vld [vmem:[%s1590_s0 + $0x598] sm:$0xff] }
 0x215   :  { %381 = vst [vmem:[%s1591_s1 + $0x588] sm:$0xff] %v185_v49  ;;  %382 = vst [vmem:[%s1591_s1 + $0x590] sm:$0xff] %v186_v50 }
 0x216   :  { %383 = vst [vmem:[%s1591_s1 + $0x598] sm:$0xff] %v187_v51 }
 0x21d   :  { %v188_v52 = vld [vmem:[%s1590_s0 + $0x5a0] sm:$0xff]  ;;  %v189_v53 = vld [vmem:[%s1590_s0 + $0x5a8] sm:$0xff]  ;;  %v190_v54 = vld [vmem:[%s1590_s0 + $0x5b0] sm:$0xff] }
 0x21e   :  { %384 = vst [vmem:[%s1591_s1 + $0x5a0] sm:$0xff] %v188_v52  ;;  %385 = vst [vmem:[%s1591_s1 + $0x5a8] sm:$0xff] %v189_v53 }
 0x21f   :  { %386 = vst [vmem:[%s1591_s1 + $0x5b0] sm:$0xff] %v190_v54 }
 0x226   :  { %v191_v55 = vld [vmem:[%s1590_s0 + $0x5b8] sm:$0xff]  ;;  %v192_v56 = vld [vmem:[%s1590_s0 + $0x5c0] sm:$0xff]  ;;  %v193_v57 = vld [vmem:[%s1590_s0 + $0x5c8] sm:$0xff] }
 0x227   :  { %387 = vst [vmem:[%s1591_s1 + $0x5b8] sm:$0xff] %v191_v55  ;;  %388 = vst [vmem:[%s1591_s1 + $0x5c0] sm:$0xff] %v192_v56 }
 0x228   :  { %389 = vst [vmem:[%s1591_s1 + $0x5c8] sm:$0xff] %v193_v57 }
 0x22f   :  { %v194_v58 = vld [vmem:[%s1590_s0 + $0x5d0] sm:$0xff]  ;;  %v195_v59 = vld [vmem:[%s1590_s0 + $0x5d8] sm:$0xff]  ;;  %v196_v60 = vld [vmem:[%s1590_s0 + $0x5e0] sm:$0xff] }
 0x230   :  { %390 = vst [vmem:[%s1591_s1 + $0x5d0] sm:$0xff] %v194_v58  ;;  %391 = vst [vmem:[%s1591_s1 + $0x5d8] sm:$0xff] %v195_v59 }
 0x231   :  { %392 = vst [vmem:[%s1591_s1 + $0x5e0] sm:$0xff] %v196_v60 }
 0x238   :  { %v197_v61 = vld [vmem:[%s1590_s0 + $0x5e8] sm:$0xff]  ;;  %v198_v62 = vld [vmem:[%s1590_s0 + $0x5f0] sm:$0xff]  ;;  %v199_v63 = vld [vmem:[%s1590_s0 + $0x5f8] sm:$0xff] }
 0x239   :  { %393 = vst [vmem:[%s1591_s1 + $0x5e8] sm:$0xff] %v197_v61  ;;  %394 = vst [vmem:[%s1591_s1 + $0x5f0] sm:$0xff] %v198_v62 }
 0x23a   :  { %395 = vst [vmem:[%s1591_s1 + $0x5f8] sm:$0xff] %v199_v63 }
 0x241   :  { %v200_v0 = vld [vmem:[%s1590_s0 + $0x600] sm:$0xff]  ;;  %v201_v1 = vld [vmem:[%s1590_s0 + $0x608] sm:$0xff]  ;;  %v202_v2 = vld [vmem:[%s1590_s0 + $0x610] sm:$0xff] }
 0x242   :  { %396 = vst [vmem:[%s1591_s1 + $0x600] sm:$0xff] %v200_v0  ;;  %397 = vst [vmem:[%s1591_s1 + $0x608] sm:$0xff] %v201_v1 }
 0x243   :  { %398 = vst [vmem:[%s1591_s1 + $0x610] sm:$0xff] %v202_v2 }
 0x24a   :  { %v203_v3 = vld [vmem:[%s1590_s0 + $0x618] sm:$0xff] }
 0x24b   :  { %399 = vst [vmem:[%s1591_s1 + $0x618] sm:$0xff] %v203_v3 }

</bundles_post_ra>
